<compile_context>
chip_gen: v7x
topology: tpu7x:2x2x1
jax: 0.10.0
libtpu: 0.0.40
codegen_flags: <defaults>
</compile_context>

<pallas_src>
import functools

import jax
import jax.numpy as jnp
from jax.experimental import pallas as pl
from jax.experimental.pallas import tpu as pltpu

_LANE = 128      # lane tile (last dim)
_SUBLANE = 8     # f32 sublane tile (second-to-last dim)


def _round_up(x, m):
    return (x + m - 1) // m * m


def _fused_mlp_kernel(*refs, dims, tiles, relu_flags):
    """Fused MLP forward.

    refs layout:
      x_ref,
      w_hbm_0, b_0, ..., w_hbm_{L-1}, b_{L-1},      (weights in HBM, biases VMEM)
      o_ref,
      act_a, act_b, wbuf, sem                        (scratch)

    dims:  padded dims (D0, D1, ..., DL), all multiples of 128
    tiles: per layer (tile_width, num_tiles) along that layer's N
    """
    num_layers = len(dims) - 1
    x_ref = refs[0]
    w_refs = [refs[1 + 2 * i] for i in range(num_layers)]
    b_refs = [refs[2 + 2 * i] for i in range(num_layers)]
    o_ref = refs[1 + 2 * num_layers]
    act_a, act_b, wbuf, sem = refs[2 + 2 * num_layers:]
    act_bufs = (act_a, act_b)

    def in_buf(li):
        return x_ref if li == 0 else act_bufs[(li - 1) % 2]

    def out_buf(li):
        return o_ref if li == num_layers - 1 else act_bufs[li % 2]

    # Flat (layer, tile) schedule so the weight-tile DMA for the next tile
    # (possibly of the next layer) overlaps the current MXU matmul.
    tasks = []
    for li in range(num_layers):
        _, n_tiles = tiles[li]
        for t in range(n_tiles):
            tasks.append((li, t))
    n_tasks = len(tasks)

    def make_copy(task_idx, slot):
        li, t = tasks[task_idx]
        k = dims[li]
        tn, _ = tiles[li]
        c0 = t * tn
        return pltpu.make_async_copy(
            w_refs[li].at[:, c0:c0 + tn],       # HBM column tile
            wbuf.at[slot, :k, :tn],             # VMEM slot
            sem.at[slot],
        )

    copies = [None] * n_tasks
    copies[0] = make_copy(0, 0)
    copies[0].start()

    for i in range(n_tasks):
        slot = i % 2
        # Prefetch the next weight tile into the other buffer slot.
        if i + 1 < n_tasks:
            copies[i + 1] = make_copy(i + 1, 1 - slot)
            copies[i + 1].start()
        copies[i].wait()

        li, t = tasks[i]
        k = dims[li]
        tn, _ = tiles[li]
        c0 = t * tn

        x_tile = in_buf(li)[:, :k]              # (Bp, k) f32
        w_tile = wbuf[slot, :k, :tn]            # (k, tn), f32 or bf16
        if w_tile.dtype != x_tile.dtype:
            x_tile = x_tile.astype(w_tile.dtype)   # bf16 MXU path
        y = jnp.dot(x_tile, w_tile, preferred_element_type=jnp.float32)
        y = y + b_refs[li][:, c0:c0 + tn]       # (1, tn) broadcast, f32
        if relu_flags[li]:
            y = jnp.maximum(y, 0.0)
        out_buf(li)[:, c0:c0 + tn] = y.astype(out_buf(li).dtype)


def fused_mlp_forward(x, params, *, tn_max=512, weight_dtype=jnp.float32,
                      vmem_limit_bytes=None):
    """x: (B, D0) f32; params: list of (W:(K,N), b:(N,)) -> (B, n_classes) f32."""
    batch, d0 = x.shape
    num_layers = len(params)
    dims = [d0] + [w.shape[1] for (w, _) in params]

    # Pad once: batch to 8 sublanes, every feature dim to 128 lanes.
    b_pad = _round_up(max(batch, 1), _SUBLANE)
    dims_p = [_round_up(d, _LANE) for d in dims]

    # Per-layer N tile (multiple of 128, <= tn_max); pad N to a tile multiple.
    tn_cap = _round_up(min(tn_max, 4096), _LANE)
    tiles = []
    for li in range(num_layers):
        n_p = dims_p[li + 1]
        tn = min(n_p, tn_cap)
        n_p = _round_up(n_p, tn)
        dims_p[li + 1] = n_p
        tiles.append((tn, n_p // tn))

    # Zero-padded operands (zero rows/cols/bias keep the math exact).
    x_p = jnp.zeros((b_pad, dims_p[0]), jnp.float32).at[:batch, :d0].set(
        x.astype(jnp.float32))
    ws_p, bs_p = [], []
    for li, (w, b) in enumerate(params):
        kp, np_ = dims_p[li], dims_p[li + 1]
        wp = jnp.zeros((kp, np_), weight_dtype).at[:w.shape[0], :w.shape[1]].set(
            w.astype(weight_dtype))
        bp = jnp.zeros((1, np_), jnp.float32).at[0, :b.shape[0]].set(
            b.astype(jnp.float32))
        ws_p.append(wp)
        bs_p.append(bp)

    k_max = max(dims_p[:-1])
    tn_all = max(tn for tn, _ in tiles)
    d_act = max(dims_p)
    w_itemsize = jnp.dtype(weight_dtype).itemsize
    relu_flags = tuple(li < num_layers - 1 for li in range(num_layers))

    kernel = functools.partial(
        _fused_mlp_kernel,
        dims=tuple(dims_p), tiles=tuple(tiles), relu_flags=relu_flags)

    in_specs = [pl.BlockSpec(memory_space=pltpu.MemorySpace.VMEM)]  # x
    args = [x_p]
    for wp, bp in zip(ws_p, bs_p):
        in_specs.append(pl.BlockSpec(memory_space=pl.ANY))          # W: HBM
        in_specs.append(pl.BlockSpec(memory_space=pltpu.MemorySpace.VMEM))
        args.extend([wp, bp])

    scratch_shapes = [
        pltpu.VMEM((b_pad, d_act), jnp.float32),      # activation ping
        pltpu.VMEM((b_pad, d_act), jnp.float32),      # activation pong
        pltpu.VMEM((2, k_max, tn_all), weight_dtype), # weight double buffer
        pltpu.SemaphoreType.DMA((2,)),
    ]

    flops = sum(2 * b_pad * dims_p[i] * dims_p[i + 1] for i in range(num_layers))
    bytes_accessed = (
        sum(int(w.size) * w_itemsize for w in ws_p)
        + sum(int(b.size) * 4 for b in bs_p)
        + int(x_p.size) * 4 + b_pad * dims_p[-1] * 4)
    cost = pl.CostEstimate(flops=flops, transcendentals=0,
                           bytes_accessed=bytes_accessed)

    if vmem_limit_bytes is None:
        need = (2 * k_max * tn_all * w_itemsize      # weight double buffer
                + 2 * b_pad * d_act * 4              # activation slabs
                + b_pad * dims_p[0] * 4 + b_pad * dims_p[-1] * 4
                + sum(int(b.size) * 4 for b in bs_p))
        # Keep comfortably within v7x's 64 MiB physical VMEM.
        vmem_limit_bytes = min(max(int(need) + (16 << 20), 32 << 20), 48 << 20)

    out_p = pl.pallas_call(
        kernel,
        out_shape=jax.ShapeDtypeStruct((b_pad, dims_p[-1]), jnp.float32),
        in_specs=in_specs,
        out_specs=pl.BlockSpec(memory_space=pltpu.MemorySpace.VMEM),
        scratch_shapes=scratch_shapes,
        compiler_params=pltpu.CompilerParams(
            vmem_limit_bytes=vmem_limit_bytes),
        cost_estimate=cost,
    )(*args)

    return out_p[:batch, :dims[-1]]


def init_densenet1d_params(key, layers, n_inputs, n_classes):
    """Deterministic init matching nn.Linear's default U(-1/sqrt(fan_in), ...)."""
    params = []
    fan_in = n_inputs
    for out_dim in list(layers) + [n_classes]:
        key, kw, kb = jax.random.split(key, 3)
        bound = 1.0 / jnp.sqrt(jnp.float32(fan_in))
        # stored as (in, out) == PyTorch weight (out, in) transposed
        w = jax.random.uniform(kw, (fan_in, out_dim), jnp.float32, -bound, bound)
        b = jax.random.uniform(kb, (out_dim,), jnp.float32, -bound, bound)
        params.append((w, b))
        fan_in = out_dim
    return params


def densenet1d_forward(params, x, **kwargs):
    """Equivalent of densenet1d.forward: (Linear -> ReLU)*N -> Linear, fused."""
    return fused_mlp_forward(x, params, **kwargs)


if __name__ == "__main__":
    # Small shapes consistent with the module structure (hidden widths scaled
    # down from [2048, 4086, ...]); tn_max=128 so some layers use >1 N-tile
    # and the cross-layer double-buffered weight streaming is exercised.
    batch = 2
    n_inputs = 32
    hidden_layers = [64, 256, 128, 32]
    n_classes = 10

    key = jax.random.PRNGKey(0)
    key, kx = jax.random.split(key)
    x = jax.random.normal(kx, (batch, n_inputs), dtype=jnp.float32)
    params = init_densenet1d_params(key, hidden_layers, n_inputs, n_classes)

    # Pure-JAX reference of the same math.
    ref = x
    for i, (w, b) in enumerate(params):
        ref = ref @ w + b
        if i != len(params) - 1:
            ref = jnp.maximum(ref, 0.0)

    # f32 weights: exact nn.Linear semantics.
    out = densenet1d_forward(params, x, tn_max=128, weight_dtype=jnp.float32)
    out = jax.block_until_ready(out)
    assert out.shape == (batch, n_classes)
    assert jnp.allclose(out, ref, atol=1e-3, rtol=1e-3)

    # bf16-streamed weights (f32 accumulation): halves HBM weight traffic.
    out_bf16 = densenet1d_forward(params, x, tn_max=128,
                                  weight_dtype=jnp.bfloat16)
    out_bf16 = jax.block_until_ready(out_bf16)
    assert out_bf16.shape == (batch, n_classes)
    assert jnp.allclose(out_bf16, ref, atol=1e-1, rtol=1e-1)

    print("KERNEL_OK")
</pallas_src>

<mosaic_0001>
module attributes {stable_mosaic.version = 11 : i64} {
  func.func @_fused_mlp_kernel(%arg0: memref<8x128xf32, #tpu.memory_space<vmem>>, %arg1: memref<128x128xf32, #tpu.memory_space<any>>, %arg2: memref<1x128xf32, #tpu.memory_space<vmem>>, %arg3: memref<128x256xf32, #tpu.memory_space<any>>, %arg4: memref<1x256xf32, #tpu.memory_space<vmem>>, %arg5: memref<256x128xf32, #tpu.memory_space<any>>, %arg6: memref<1x128xf32, #tpu.memory_space<vmem>>, %arg7: memref<128x128xf32, #tpu.memory_space<any>>, %arg8: memref<1x128xf32, #tpu.memory_space<vmem>>, %arg9: memref<128x128xf32, #tpu.memory_space<any>>, %arg10: memref<1x128xf32, #tpu.memory_space<vmem>>, %arg11: memref<8x128xf32, #tpu.memory_space<vmem>>, %arg12: memref<8x256xf32, #tpu.memory_space<vmem>>, %arg13: memref<8x256xf32, #tpu.memory_space<vmem>>, %arg14: memref<2x256x128xf32, #tpu.memory_space<vmem>>, %arg15: memref<2x!tpu.dma_semaphore, #tpu.memory_space<semaphore_mem>>) attributes {dimension_semantics = [], scalar_prefetch = 0 : i64, scratch_operands = 4 : i64, tpu.core_type = #tpu.core_type<tc>} {
    %c0_i32 = arith.constant 0 : i32
    %c0_i32_0 = arith.constant 0 : i32
    %c0_i32_1 = arith.constant 0 : i32
    %c0_i32_2 = arith.constant 0 : i32
    %0 = tpu.memref_slice %arg1[%c0_i32_1, %c0_i32_2] : memref<128x128xf32, #tpu.memory_space<any>> -> memref<128x128xf32, #tpu.memory_space<any>>
    %c0_i32_3 = arith.constant 0 : i32
    %c0_i32_4 = arith.constant 0 : i32
    %1 = tpu.memref_slice %arg14[%c0_i32, %c0_i32_3, %c0_i32_4] : memref<2x256x128xf32, #tpu.memory_space<vmem>> -> memref<1x128x128xf32, #tpu.memory_space<vmem>>
    %2 = tpu.memref_squeeze %1 : memref<1x128x128xf32, #tpu.memory_space<vmem>> -> memref<128x128xf32, #tpu.memory_space<vmem>>
    %3 = tpu.memref_slice %arg15[%c0_i32_0] : memref<2x!tpu.dma_semaphore, #tpu.memory_space<semaphore_mem>> -> memref<1x!tpu.dma_semaphore, #tpu.memory_space<semaphore_mem>>
    %4 = tpu.memref_squeeze %3 : memref<1x!tpu.dma_semaphore, #tpu.memory_space<semaphore_mem>> -> memref<!tpu.dma_semaphore, #tpu.memory_space<semaphore_mem>>
    tpu.enqueue_dma source(%0 : memref<128x128xf32, #tpu.memory_space<any>>) target(%2 : memref<128x128xf32, #tpu.memory_space<vmem>>) target_semaphore(%4 : memref<!tpu.dma_semaphore, #tpu.memory_space<semaphore_mem>>)
    %c1_i32 = arith.constant 1 : i32
    %c1_i32_5 = arith.constant 1 : i32
    %c0_i32_6 = arith.constant 0 : i32
    %c0_i32_7 = arith.constant 0 : i32
    %5 = tpu.memref_slice %arg3[%c0_i32_6, %c0_i32_7] : memref<128x256xf32, #tpu.memory_space<any>> -> memref<128x128xf32, #tpu.memory_space<any>>
    %c0_i32_8 = arith.constant 0 : i32
    %c0_i32_9 = arith.constant 0 : i32
    %6 = tpu.memref_slice %arg14[%c1_i32, %c0_i32_8, %c0_i32_9] : memref<2x256x128xf32, #tpu.memory_space<vmem>> -> memref<1x128x128xf32, #tpu.memory_space<vmem>>
    %7 = tpu.memref_squeeze %6 : memref<1x128x128xf32, #tpu.memory_space<vmem>> -> memref<128x128xf32, #tpu.memory_space<vmem>>
    %8 = tpu.memref_slice %arg15[%c1_i32_5] : memref<2x!tpu.dma_semaphore, #tpu.memory_space<semaphore_mem>> -> memref<1x!tpu.dma_semaphore, #tpu.memory_space<semaphore_mem>>
    %9 = tpu.memref_squeeze %8 : memref<1x!tpu.dma_semaphore, #tpu.memory_space<semaphore_mem>> -> memref<!tpu.dma_semaphore, #tpu.memory_space<semaphore_mem>>
    tpu.enqueue_dma source(%5 : memref<128x128xf32, #tpu.memory_space<any>>) target(%7 : memref<128x128xf32, #tpu.memory_space<vmem>>) target_semaphore(%9 : memref<!tpu.dma_semaphore, #tpu.memory_space<semaphore_mem>>)
    %c0_i32_10 = arith.constant 0 : i32
    %c0_i32_11 = arith.constant 0 : i32
    %c0_i32_12 = arith.constant 0 : i32
    %c0_i32_13 = arith.constant 0 : i32
    %10 = tpu.memref_slice %arg1[%c0_i32_12, %c0_i32_13] : memref<128x128xf32, #tpu.memory_space<any>> -> memref<128x128xf32, #tpu.memory_space<any>>
    %c0_i32_14 = arith.constant 0 : i32
    %c0_i32_15 = arith.constant 0 : i32
    %11 = tpu.memref_slice %arg14[%c0_i32_10, %c0_i32_14, %c0_i32_15] : memref<2x256x128xf32, #tpu.memory_space<vmem>> -> memref<1x128x128xf32, #tpu.memory_space<vmem>>
    %12 = tpu.memref_squeeze %11 : memref<1x128x128xf32, #tpu.memory_space<vmem>> -> memref<128x128xf32, #tpu.memory_space<vmem>>
    %13 = tpu.memref_slice %arg15[%c0_i32_11] : memref<2x!tpu.dma_semaphore, #tpu.memory_space<semaphore_mem>> -> memref<1x!tpu.dma_semaphore, #tpu.memory_space<semaphore_mem>>
    %14 = tpu.memref_squeeze %13 : memref<1x!tpu.dma_semaphore, #tpu.memory_space<semaphore_mem>> -> memref<!tpu.dma_semaphore, #tpu.memory_space<semaphore_mem>>
    tpu.wait_dma2 semaphore(%14 : memref<!tpu.dma_semaphore, #tpu.memory_space<semaphore_mem>>) src(%10 : memref<128x128xf32, #tpu.memory_space<any>>) dst(%12 : memref<128x128xf32, #tpu.memory_space<vmem>>)
    %c0 = arith.constant 0 : index
    %c0_16 = arith.constant 0 : index
    %15 = vector.load %arg0[%c0, %c0_16] : memref<8x128xf32, #tpu.memory_space<vmem>>, vector<8x128xf32>
    %c0_17 = arith.constant 0 : index
    %c0_18 = arith.constant 0 : index
    %c0_19 = arith.constant 0 : index
    %16 = vector.load %arg14[%c0_17, %c0_18, %c0_19] : memref<2x256x128xf32, #tpu.memory_space<vmem>>, vector<1x128x128xf32>
    %17 = vector.shape_cast %16 : vector<1x128x128xf32> to vector<128x128xf32>
    %cst = arith.constant dense<0.000000e+00> : vector<8x128xf32>
    %18 = tpu.matmul %15, %17, %cst {dimension_numbers = #tpu.dot_dimension_numbers<[1], [0], [0], [1], [0, 0, 1, 1], [], []>} : vector<8x128xf32>, vector<128x128xf32>, vector<8x128xf32> -> vector<8x128xf32>
    %c0_20 = arith.constant 0 : index
    %c0_21 = arith.constant 0 : index
    %19 = vector.load %arg2[%c0_20, %c0_21] : memref<1x128xf32, #tpu.memory_space<vmem>>, vector<1x128xf32>
    %20 = vector.broadcast %19 : vector<1x128xf32> to vector<8x128xf32>
    %21 = arith.addf %18, %20 : vector<8x128xf32>
    %cst_22 = arith.constant 0.000000e+00 : f32
    %22 = vector.broadcast %cst_22 : f32 to vector<8x128xf32>
    %23 = arith.maximumf %21, %22 : vector<8x128xf32>
    %c0_23 = arith.constant 0 : index
    %c0_24 = arith.constant 0 : index
    %24 = vector.load %arg12[%c0_23, %c0_24] : memref<8x256xf32, #tpu.memory_space<vmem>>, vector<8x128xf32>
    tpu.vector_store %arg12[%c0_23, %c0_24], %23 {strides = array<i32>} : memref<8x256xf32, #tpu.memory_space<vmem>>, vector<8x128xf32>,
    %c0_i32_25 = arith.constant 0 : i32
    %c0_i32_26 = arith.constant 0 : i32
    %c0_i32_27 = arith.constant 0 : i32
    %c128_i32 = arith.constant 128 : i32
    %25 = tpu.memref_slice %arg3[%c0_i32_27, %c128_i32] : memref<128x256xf32, #tpu.memory_space<any>> -> memref<128x128xf32, #tpu.memory_space<any>>
    %c0_i32_28 = arith.constant 0 : i32
    %c0_i32_29 = arith.constant 0 : i32
    %26 = tpu.memref_slice %arg14[%c0_i32_25, %c0_i32_28, %c0_i32_29] : memref<2x256x128xf32, #tpu.memory_space<vmem>> -> memref<1x128x128xf32, #tpu.memory_space<vmem>>
    %27 = tpu.memref_squeeze %26 : memref<1x128x128xf32, #tpu.memory_space<vmem>> -> memref<128x128xf32, #tpu.memory_space<vmem>>
    %28 = tpu.memref_slice %arg15[%c0_i32_26] : memref<2x!tpu.dma_semaphore, #tpu.memory_space<semaphore_mem>> -> memref<1x!tpu.dma_semaphore, #tpu.memory_space<semaphore_mem>>
    %29 = tpu.memref_squeeze %28 : memref<1x!tpu.dma_semaphore, #tpu.memory_space<semaphore_mem>> -> memref<!tpu.dma_semaphore, #tpu.memory_space<semaphore_mem>>
    tpu.enqueue_dma source(%25 : memref<128x128xf32, #tpu.memory_space<any>>) target(%27 : memref<128x128xf32, #tpu.memory_space<vmem>>) target_semaphore(%29 : memref<!tpu.dma_semaphore, #tpu.memory_space<semaphore_mem>>)
    %c1_i32_30 = arith.constant 1 : i32
    %c1_i32_31 = arith.constant 1 : i32
    %c0_i32_32 = arith.constant 0 : i32
    %c0_i32_33 = arith.constant 0 : i32
    %30 = tpu.memref_slice %arg3[%c0_i32_32, %c0_i32_33] : memref<128x256xf32, #tpu.memory_space<any>> -> memref<128x128xf32, #tpu.memory_space<any>>
    %c0_i32_34 = arith.constant 0 : i32
    %c0_i32_35 = arith.constant 0 : i32
    %31 = tpu.memref_slice %arg14[%c1_i32_30, %c0_i32_34, %c0_i32_35] : memref<2x256x128xf32, #tpu.memory_space<vmem>> -> memref<1x128x128xf32, #tpu.memory_space<vmem>>
    %32 = tpu.memref_squeeze %31 : memref<1x128x128xf32, #tpu.memory_space<vmem>> -> memref<128x128xf32, #tpu.memory_space<vmem>>
    %33 = tpu.memref_slice %arg15[%c1_i32_31] : memref<2x!tpu.dma_semaphore, #tpu.memory_space<semaphore_mem>> -> memref<1x!tpu.dma_semaphore, #tpu.memory_space<semaphore_mem>>
    %34 = tpu.memref_squeeze %33 : memref<1x!tpu.dma_semaphore, #tpu.memory_space<semaphore_mem>> -> memref<!tpu.dma_semaphore, #tpu.memory_space<semaphore_mem>>
    tpu.wait_dma2 semaphore(%34 : memref<!tpu.dma_semaphore, #tpu.memory_space<semaphore_mem>>) src(%30 : memref<128x128xf32, #tpu.memory_space<any>>) dst(%32 : memref<128x128xf32, #tpu.memory_space<vmem>>)
    %c0_36 = arith.constant 0 : index
    %c0_37 = arith.constant 0 : index
    %35 = vector.load %arg12[%c0_36, %c0_37] : memref<8x256xf32, #tpu.memory_space<vmem>>, vector<8x128xf32>
    %c1 = arith.constant 1 : index
    %c0_38 = arith.constant 0 : index
    %c0_39 = arith.constant 0 : index
    %36 = vector.load %arg14[%c1, %c0_38, %c0_39] : memref<2x256x128xf32, #tpu.memory_space<vmem>>, vector<1x128x128xf32>
    %37 = vector.shape_cast %36 : vector<1x128x128xf32> to vector<128x128xf32>
    %cst_40 = arith.constant dense<0.000000e+00> : vector<8x128xf32>
    %38 = tpu.matmul %35, %37, %cst_40 {dimension_numbers = #tpu.dot_dimension_numbers<[1], [0], [0], [1], [0, 0, 1, 1], [], []>} : vector<8x128xf32>, vector<128x128xf32>, vector<8x128xf32> -> vector<8x128xf32>
    %c0_41 = arith.constant 0 : index
    %c0_42 = arith.constant 0 : index
    %39 = vector.load %arg4[%c0_41, %c0_42] : memref<1x256xf32, #tpu.memory_space<vmem>>, vector<1x128xf32>
    %40 = vector.broadcast %39 : vector<1x128xf32> to vector<8x128xf32>
    %41 = arith.addf %38, %40 : vector<8x128xf32>
    %cst_43 = arith.constant 0.000000e+00 : f32
    %42 = vector.broadcast %cst_43 : f32 to vector<8x128xf32>
    %43 = arith.maximumf %41, %42 : vector<8x128xf32>
    %c0_44 = arith.constant 0 : index
    %c0_45 = arith.constant 0 : index
    %44 = vector.load %arg13[%c0_44, %c0_45] : memref<8x256xf32, #tpu.memory_space<vmem>>, vector<8x128xf32>
    tpu.vector_store %arg13[%c0_44, %c0_45], %43 {strides = array<i32>} : memref<8x256xf32, #tpu.memory_space<vmem>>, vector<8x128xf32>,
    %c1_i32_46 = arith.constant 1 : i32
    %c1_i32_47 = arith.constant 1 : i32
    %c0_i32_48 = arith.constant 0 : i32
    %c0_i32_49 = arith.constant 0 : i32
    %45 = tpu.memref_slice %arg5[%c0_i32_48, %c0_i32_49] : memref<256x128xf32, #tpu.memory_space<any>> -> memref<256x128xf32, #tpu.memory_space<any>>
    %c0_i32_50 = arith.constant 0 : i32
    %c0_i32_51 = arith.constant 0 : i32
    %46 = tpu.memref_slice %arg14[%c1_i32_46, %c0_i32_50, %c0_i32_51] : memref<2x256x128xf32, #tpu.memory_space<vmem>> -> memref<1x256x128xf32, #tpu.memory_space<vmem>>
    %47 = tpu.memref_squeeze %46 : memref<1x256x128xf32, #tpu.memory_space<vmem>> -> memref<256x128xf32, #tpu.memory_space<vmem>>
    %48 = tpu.memref_slice %arg15[%c1_i32_47] : memref<2x!tpu.dma_semaphore, #tpu.memory_space<semaphore_mem>> -> memref<1x!tpu.dma_semaphore, #tpu.memory_space<semaphore_mem>>
    %49 = tpu.memref_squeeze %48 : memref<1x!tpu.dma_semaphore, #tpu.memory_space<semaphore_mem>> -> memref<!tpu.dma_semaphore, #tpu.memory_space<semaphore_mem>>
    tpu.enqueue_dma source(%45 : memref<256x128xf32, #tpu.memory_space<any>>) target(%47 : memref<256x128xf32, #tpu.memory_space<vmem>>) target_semaphore(%49 : memref<!tpu.dma_semaphore, #tpu.memory_space<semaphore_mem>>)
    %c0_i32_52 = arith.constant 0 : i32
    %c0_i32_53 = arith.constant 0 : i32
    %c0_i32_54 = arith.constant 0 : i32
    %c128_i32_55 = arith.constant 128 : i32
    %50 = tpu.memref_slice %arg3[%c0_i32_54, %c128_i32_55] : memref<128x256xf32, #tpu.memory_space<any>> -> memref<128x128xf32, #tpu.memory_space<any>>
    %c0_i32_56 = arith.constant 0 : i32
    %c0_i32_57 = arith.constant 0 : i32
    %51 = tpu.memref_slice %arg14[%c0_i32_52, %c0_i32_56, %c0_i32_57] : memref<2x256x128xf32, #tpu.memory_space<vmem>> -> memref<1x128x128xf32, #tpu.memory_space<vmem>>
    %52 = tpu.memref_squeeze %51 : memref<1x128x128xf32, #tpu.memory_space<vmem>> -> memref<128x128xf32, #tpu.memory_space<vmem>>
    %53 = tpu.memref_slice %arg15[%c0_i32_53] : memref<2x!tpu.dma_semaphore, #tpu.memory_space<semaphore_mem>> -> memref<1x!tpu.dma_semaphore, #tpu.memory_space<semaphore_mem>>
    %54 = tpu.memref_squeeze %53 : memref<1x!tpu.dma_semaphore, #tpu.memory_space<semaphore_mem>> -> memref<!tpu.dma_semaphore, #tpu.memory_space<semaphore_mem>>
    tpu.wait_dma2 semaphore(%54 : memref<!tpu.dma_semaphore, #tpu.memory_space<semaphore_mem>>) src(%50 : memref<128x128xf32, #tpu.memory_space<any>>) dst(%52 : memref<128x128xf32, #tpu.memory_space<vmem>>)
    %c0_58 = arith.constant 0 : index
    %c0_59 = arith.constant 0 : index
    %55 = vector.load %arg12[%c0_58, %c0_59] : memref<8x256xf32, #tpu.memory_space<vmem>>, vector<8x128xf32>
    %c0_60 = arith.constant 0 : index
    %c0_61 = arith.constant 0 : index
    %c0_62 = arith.constant 0 : index
    %56 = vector.load %arg14[%c0_60, %c0_61, %c0_62] : memref<2x256x128xf32, #tpu.memory_space<vmem>>, vector<1x128x128xf32>
    %57 = vector.shape_cast %56 : vector<1x128x128xf32> to vector<128x128xf32>
    %cst_63 = arith.constant dense<0.000000e+00> : vector<8x128xf32>
    %58 = tpu.matmul %55, %57, %cst_63 {dimension_numbers = #tpu.dot_dimension_numbers<[1], [0], [0], [1], [0, 0, 1, 1], [], []>} : vector<8x128xf32>, vector<128x128xf32>, vector<8x128xf32> -> vector<8x128xf32>
    %c0_64 = arith.constant 0 : index
    %c128 = arith.constant 128 : index
    %59 = vector.load %arg4[%c0_64, %c128] : memref<1x256xf32, #tpu.memory_space<vmem>>, vector<1x128xf32>
    %60 = vector.broadcast %59 : vector<1x128xf32> to vector<8x128xf32>
    %61 = arith.addf %58, %60 : vector<8x128xf32>
    %cst_65 = arith.constant 0.000000e+00 : f32
    %62 = vector.broadcast %cst_65 : f32 to vector<8x128xf32>
    %63 = arith.maximumf %61, %62 : vector<8x128xf32>
    %c0_66 = arith.constant 0 : index
    %c128_67 = arith.constant 128 : index
    %64 = vector.load %arg13[%c0_66, %c128_67] : memref<8x256xf32, #tpu.memory_space<vmem>>, vector<8x128xf32>
    tpu.vector_store %arg13[%c0_66, %c128_67], %63 {strides = array<i32>} : memref<8x256xf32, #tpu.memory_space<vmem>>, vector<8x128xf32>,
    %c0_i32_68 = arith.constant 0 : i32
    %c0_i32_69 = arith.constant 0 : i32
    %c0_i32_70 = arith.constant 0 : i32
    %c0_i32_71 = arith.constant 0 : i32
    %65 = tpu.memref_slice %arg7[%c0_i32_70, %c0_i32_71] : memref<128x128xf32, #tpu.memory_space<any>> -> memref<128x128xf32, #tpu.memory_space<any>>
    %c0_i32_72 = arith.constant 0 : i32
    %c0_i32_73 = arith.constant 0 : i32
    %66 = tpu.memref_slice %arg14[%c0_i32_68, %c0_i32_72, %c0_i32_73] : memref<2x256x128xf32, #tpu.memory_space<vmem>> -> memref<1x128x128xf32, #tpu.memory_space<vmem>>
    %67 = tpu.memref_squeeze %66 : memref<1x128x128xf32, #tpu.memory_space<vmem>> -> memref<128x128xf32, #tpu.memory_space<vmem>>
    %68 = tpu.memref_slice %arg15[%c0_i32_69] : memref<2x!tpu.dma_semaphore, #tpu.memory_space<semaphore_mem>> -> memref<1x!tpu.dma_semaphore, #tpu.memory_space<semaphore_mem>>
    %69 = tpu.memref_squeeze %68 : memref<1x!tpu.dma_semaphore, #tpu.memory_space<semaphore_mem>> -> memref<!tpu.dma_semaphore, #tpu.memory_space<semaphore_mem>>
    tpu.enqueue_dma source(%65 : memref<128x128xf32, #tpu.memory_space<any>>) target(%67 : memref<128x128xf32, #tpu.memory_space<vmem>>) target_semaphore(%69 : memref<!tpu.dma_semaphore, #tpu.memory_space<semaphore_mem>>)
    %c1_i32_74 = arith.constant 1 : i32
    %c1_i32_75 = arith.constant 1 : i32
    %c0_i32_76 = arith.constant 0 : i32
    %c0_i32_77 = arith.constant 0 : i32
    %70 = tpu.memref_slice %arg5[%c0_i32_76, %c0_i32_77] : memref<256x128xf32, #tpu.memory_space<any>> -> memref<256x128xf32, #tpu.memory_space<any>>
    %c0_i32_78 = arith.constant 0 : i32
    %c0_i32_79 = arith.constant 0 : i32
    %71 = tpu.memref_slice %arg14[%c1_i32_74, %c0_i32_78, %c0_i32_79] : memref<2x256x128xf32, #tpu.memory_space<vmem>> -> memref<1x256x128xf32, #tpu.memory_space<vmem>>
    %72 = tpu.memref_squeeze %71 : memref<1x256x128xf32, #tpu.memory_space<vmem>> -> memref<256x128xf32, #tpu.memory_space<vmem>>
    %73 = tpu.memref_slice %arg15[%c1_i32_75] : memref<2x!tpu.dma_semaphore, #tpu.memory_space<semaphore_mem>> -> memref<1x!tpu.dma_semaphore, #tpu.memory_space<semaphore_mem>>
    %74 = tpu.memref_squeeze %73 : memref<1x!tpu.dma_semaphore, #tpu.memory_space<semaphore_mem>> -> memref<!tpu.dma_semaphore, #tpu.memory_space<semaphore_mem>>
    tpu.wait_dma2 semaphore(%74 : memref<!tpu.dma_semaphore, #tpu.memory_space<semaphore_mem>>) src(%70 : memref<256x128xf32, #tpu.memory_space<any>>) dst(%72 : memref<256x128xf32, #tpu.memory_space<vmem>>)
    %c0_80 = arith.constant 0 : index
    %c0_81 = arith.constant 0 : index
    %75 = vector.load %arg13[%c0_80, %c0_81] : memref<8x256xf32, #tpu.memory_space<vmem>>, vector<8x256xf32>
    %c1_82 = arith.constant 1 : index
    %c0_83 = arith.constant 0 : index
    %c0_84 = arith.constant 0 : index
    %76 = vector.load %arg14[%c1_82, %c0_83, %c0_84] : memref<2x256x128xf32, #tpu.memory_space<vmem>>, vector<1x256x128xf32>
    %77 = vector.shape_cast %76 : vector<1x256x128xf32> to vector<256x128xf32>
    %cst_85 = arith.constant dense<0.000000e+00> : vector<8x128xf32>
    %78 = tpu.matmul %75, %77, %cst_85 {dimension_numbers = #tpu.dot_dimension_numbers<[1], [0], [0], [1], [0, 0, 1, 1], [], []>} : vector<8x256xf32>, vector<256x128xf32>, vector<8x128xf32> -> vector<8x128xf32>
    %c0_86 = arith.constant 0 : index
    %c0_87 = arith.constant 0 : index
    %79 = vector.load %arg6[%c0_86, %c0_87] : memref<1x128xf32, #tpu.memory_space<vmem>>, vector<1x128xf32>
    %80 = vector.broadcast %79 : vector<1x128xf32> to vector<8x128xf32>
    %81 = arith.addf %78, %80 : vector<8x128xf32>
    %cst_88 = arith.constant 0.000000e+00 : f32
    %82 = vector.broadcast %cst_88 : f32 to vector<8x128xf32>
    %83 = arith.maximumf %81, %82 : vector<8x128xf32>
    %c0_89 = arith.constant 0 : index
    %c0_90 = arith.constant 0 : index
    %84 = vector.load %arg12[%c0_89, %c0_90] : memref<8x256xf32, #tpu.memory_space<vmem>>, vector<8x128xf32>
    tpu.vector_store %arg12[%c0_89, %c0_90], %83 {strides = array<i32>} : memref<8x256xf32, #tpu.memory_space<vmem>>, vector<8x128xf32>,
    %c1_i32_91 = arith.constant 1 : i32
    %c1_i32_92 = arith.constant 1 : i32
    %c0_i32_93 = arith.constant 0 : i32
    %c0_i32_94 = arith.constant 0 : i32
    %85 = tpu.memref_slice %arg9[%c0_i32_93, %c0_i32_94] : memref<128x128xf32, #tpu.memory_space<any>> -> memref<128x128xf32, #tpu.memory_space<any>>
    %c0_i32_95 = arith.constant 0 : i32
    %c0_i32_96 = arith.constant 0 : i32
    %86 = tpu.memref_slice %arg14[%c1_i32_91, %c0_i32_95, %c0_i32_96] : memref<2x256x128xf32, #tpu.memory_space<vmem>> -> memref<1x128x128xf32, #tpu.memory_space<vmem>>
    %87 = tpu.memref_squeeze %86 : memref<1x128x128xf32, #tpu.memory_space<vmem>> -> memref<128x128xf32, #tpu.memory_space<vmem>>
    %88 = tpu.memref_slice %arg15[%c1_i32_92] : memref<2x!tpu.dma_semaphore, #tpu.memory_space<semaphore_mem>> -> memref<1x!tpu.dma_semaphore, #tpu.memory_space<semaphore_mem>>
    %89 = tpu.memref_squeeze %88 : memref<1x!tpu.dma_semaphore, #tpu.memory_space<semaphore_mem>> -> memref<!tpu.dma_semaphore, #tpu.memory_space<semaphore_mem>>
    tpu.enqueue_dma source(%85 : memref<128x128xf32, #tpu.memory_space<any>>) target(%87 : memref<128x128xf32, #tpu.memory_space<vmem>>) target_semaphore(%89 : memref<!tpu.dma_semaphore, #tpu.memory_space<semaphore_mem>>)
    %c0_i32_97 = arith.constant 0 : i32
    %c0_i32_98 = arith.constant 0 : i32
    %c0_i32_99 = arith.constant 0 : i32
    %c0_i32_100 = arith.constant 0 : i32
    %90 = tpu.memref_slice %arg7[%c0_i32_99, %c0_i32_100] : memref<128x128xf32, #tpu.memory_space<any>> -> memref<128x128xf32, #tpu.memory_space<any>>
    %c0_i32_101 = arith.constant 0 : i32
    %c0_i32_102 = arith.constant 0 : i32
    %91 = tpu.memref_slice %arg14[%c0_i32_97, %c0_i32_101, %c0_i32_102] : memref<2x256x128xf32, #tpu.memory_space<vmem>> -> memref<1x128x128xf32, #tpu.memory_space<vmem>>
    %92 = tpu.memref_squeeze %91 : memref<1x128x128xf32, #tpu.memory_space<vmem>> -> memref<128x128xf32, #tpu.memory_space<vmem>>
    %93 = tpu.memref_slice %arg15[%c0_i32_98] : memref<2x!tpu.dma_semaphore, #tpu.memory_space<semaphore_mem>> -> memref<1x!tpu.dma_semaphore, #tpu.memory_space<semaphore_mem>>
    %94 = tpu.memref_squeeze %93 : memref<1x!tpu.dma_semaphore, #tpu.memory_space<semaphore_mem>> -> memref<!tpu.dma_semaphore, #tpu.memory_space<semaphore_mem>>
    tpu.wait_dma2 semaphore(%94 : memref<!tpu.dma_semaphore, #tpu.memory_space<semaphore_mem>>) src(%90 : memref<128x128xf32, #tpu.memory_space<any>>) dst(%92 : memref<128x128xf32, #tpu.memory_space<vmem>>)
    %c0_103 = arith.constant 0 : index
    %c0_104 = arith.constant 0 : index
    %95 = vector.load %arg12[%c0_103, %c0_104] : memref<8x256xf32, #tpu.memory_space<vmem>>, vector<8x128xf32>
    %c0_105 = arith.constant 0 : index
    %c0_106 = arith.constant 0 : index
    %c0_107 = arith.constant 0 : index
    %96 = vector.load %arg14[%c0_105, %c0_106, %c0_107] : memref<2x256x128xf32, #tpu.memory_space<vmem>>, vector<1x128x128xf32>
    %97 = vector.shape_cast %96 : vector<1x128x128xf32> to vector<128x128xf32>
    %cst_108 = arith.constant dense<0.000000e+00> : vector<8x128xf32>
    %98 = tpu.matmul %95, %97, %cst_108 {dimension_numbers = #tpu.dot_dimension_numbers<[1], [0], [0], [1], [0, 0, 1, 1], [], []>} : vector<8x128xf32>, vector<128x128xf32>, vector<8x128xf32> -> vector<8x128xf32>
    %c0_109 = arith.constant 0 : index
    %c0_110 = arith.constant 0 : index
    %99 = vector.load %arg8[%c0_109, %c0_110] : memref<1x128xf32, #tpu.memory_space<vmem>>, vector<1x128xf32>
    %100 = vector.broadcast %99 : vector<1x128xf32> to vector<8x128xf32>
    %101 = arith.addf %98, %100 : vector<8x128xf32>
    %cst_111 = arith.constant 0.000000e+00 : f32
    %102 = vector.broadcast %cst_111 : f32 to vector<8x128xf32>
    %103 = arith.maximumf %101, %102 : vector<8x128xf32>
    %c0_112 = arith.constant 0 : index
    %c0_113 = arith.constant 0 : index
    %104 = vector.load %arg13[%c0_112, %c0_113] : memref<8x256xf32, #tpu.memory_space<vmem>>, vector<8x128xf32>
    tpu.vector_store %arg13[%c0_112, %c0_113], %103 {strides = array<i32>} : memref<8x256xf32, #tpu.memory_space<vmem>>, vector<8x128xf32>,
    %c1_i32_114 = arith.constant 1 : i32
    %c1_i32_115 = arith.constant 1 : i32
    %c0_i32_116 = arith.constant 0 : i32
    %c0_i32_117 = arith.constant 0 : i32
    %105 = tpu.memref_slice %arg9[%c0_i32_116, %c0_i32_117] : memref<128x128xf32, #tpu.memory_space<any>> -> memref<128x128xf32, #tpu.memory_space<any>>
    %c0_i32_118 = arith.constant 0 : i32
    %c0_i32_119 = arith.constant 0 : i32
    %106 = tpu.memref_slice %arg14[%c1_i32_114, %c0_i32_118, %c0_i32_119] : memref<2x256x128xf32, #tpu.memory_space<vmem>> -> memref<1x128x128xf32, #tpu.memory_space<vmem>>
    %107 = tpu.memref_squeeze %106 : memref<1x128x128xf32, #tpu.memory_space<vmem>> -> memref<128x128xf32, #tpu.memory_space<vmem>>
    %108 = tpu.memref_slice %arg15[%c1_i32_115] : memref<2x!tpu.dma_semaphore, #tpu.memory_space<semaphore_mem>> -> memref<1x!tpu.dma_semaphore, #tpu.memory_space<semaphore_mem>>
    %109 = tpu.memref_squeeze %108 : memref<1x!tpu.dma_semaphore, #tpu.memory_space<semaphore_mem>> -> memref<!tpu.dma_semaphore, #tpu.memory_space<semaphore_mem>>
    tpu.wait_dma2 semaphore(%109 : memref<!tpu.dma_semaphore, #tpu.memory_space<semaphore_mem>>) src(%105 : memref<128x128xf32, #tpu.memory_space<any>>) dst(%107 : memref<128x128xf32, #tpu.memory_space<vmem>>)
    %c0_120 = arith.constant 0 : index
    %c0_121 = arith.constant 0 : index
    %110 = vector.load %arg13[%c0_120, %c0_121] : memref<8x256xf32, #tpu.memory_space<vmem>>, vector<8x128xf32>
    %c1_122 = arith.constant 1 : index
    %c0_123 = arith.constant 0 : index
    %c0_124 = arith.constant 0 : index
    %111 = vector.load %arg14[%c1_122, %c0_123, %c0_124] : memref<2x256x128xf32, #tpu.memory_space<vmem>>, vector<1x128x128xf32>
    %112 = vector.shape_cast %111 : vector<1x128x128xf32> to vector<128x128xf32>
    %cst_125 = arith.constant dense<0.000000e+00> : vector<8x128xf32>
    %113 = tpu.matmul %110, %112, %cst_125 {dimension_numbers = #tpu.dot_dimension_numbers<[1], [0], [0], [1], [0, 0, 1, 1], [], []>} : vector<8x128xf32>, vector<128x128xf32>, vector<8x128xf32> -> vector<8x128xf32>
    %c0_126 = arith.constant 0 : index
    %c0_127 = arith.constant 0 : index
    %114 = vector.load %arg10[%c0_126, %c0_127] : memref<1x128xf32, #tpu.memory_space<vmem>>, vector<1x128xf32>
    %115 = vector.broadcast %114 : vector<1x128xf32> to vector<8x128xf32>
    %116 = arith.addf %113, %115 : vector<8x128xf32>
    %c0_128 = arith.constant 0 : index
    %c0_129 = arith.constant 0 : index
    %117 = vector.load %arg11[%c0_128, %c0_129] : memref<8x128xf32, #tpu.memory_space<vmem>>, vector<8x128xf32>
    tpu.vector_store %arg11[%c0_128, %c0_129], %116 {strides = array<i32>} : memref<8x128xf32, #tpu.memory_space<vmem>>, vector<8x128xf32>,
    return
  }
}

</mosaic_0001>

<bundles_post_ra>
// kernel: tpu_custom_call.1
= control target key start
LH: loop header
LB: loop body
LE: loop exit
PB: predicated region body
PF: predicated region fallthrough
CT: control target
= control target key end

     0   :  { %16 = vsyncpa [#allocation7], 0  ;;  %s1718_s0 = inlined_call_operand.hbm [shape: f32[8,128], index: 0, kind: input, shape index: {}]   ;;  %s1719_s1 = inlined_call_operand.hbm [shape: f32[128,128], index: 1, kind: input, shape index: {}]   ;;  %s1720_s2 = inlined_call_operand.vmem [shape: f32[1,128], index: 2, kind: input, shape index: {}]   ;;  %s1721_s3 = inlined_call_operand.hbm [shape: f32[128,256], index: 3, kind: input, shape index: {}]   ;;  %s1722_s4 = inlined_call_operand.vmem [shape: f32[1,256], index: 4, kind: input, shape index: {}]   ;;  %s1723_s5 = inlined_call_operand.hbm [shape: f32[256,128], index: 5, kind: input, shape index: {}]   ;;  %s1724_s6 = inlined_call_operand.vmem [shape: f32[1,128], index: 6, kind: input, shape index: {}]   ;;  %s1725_s7 = inlined_call_operand.hbm [shape: f32[128,128], index: 7, kind: input, shape index: {}]   ;;  %s1726_s8 = inlined_call_operand.vmem [shape: f32[1,128], index: 8, kind: input, shape index: {}]   ;;  %s1727_s9 = inlined_call_operand.hbm [shape: f32[128,128], index: 9, kind: input, shape index: {}]   ;;  %s1728_s10 = inlined_call_operand.vmem [shape: f32[1,128], index: 10, kind: input, shape index: {}]   ;;  %s1729_s11 = inlined_call_operand.hbm [shape: f32[8,128], index: 11, kind: output, shape index: {}]  }
   0x1   :  { %17 = vsyncpa [#allocation8], 0  ;;  %s1394_s17 = smov [#allocation6]   ;;  %s1199_s21 = scalar_lea.hbm %s1718_s0, 128 }
   0x2   :  { %s24_s18 = sshll.u32 %s1394_s17, 4  ;;  %p1200_p0 = scmp.ne.s32.totalorder %s1718_s0, %s1199_s21  ;;  %s25_s18 = int_to_ptr.vmem [resolvable:$true] %s24_s18 }
   0x3   :  { %p1203_p1 = scmp.lt.u32.totalorder %s1199_s21, %s1718_s0 }
   0x5   :  { %p1205_p2 = pnand %p1203_p1, %p1200_p0 }
   0x7   :  { %1208 = shalt.err (!%p1205_p2)
}
   0x8   :  { %s1209_s26 = scalar_lea.vmem %s25_s18, 128  ;;  %p1214_p4 = scmp.lt.s32.totalorder %s25_s18, %s25_s18 }
   0x9   :  { %p1210_p3 = scmp.ne.s32.totalorder %s25_s18, %s1209_s26  ;;  %p1215_p5 = scmp.lt.s32.totalorder %s1209_s26, %s1209_s26 }
   0xb   :  { %p1216_p6 = por %p1215_p5, %p1214_p4 }
   0xd   :  { %p1217_p7 = pnand %p1216_p6, %p1210_p3 }
   0xf   :  { %1220 = shalt.err (!%p1217_p7)
}
  0x10   :  { %27 = dma.hbm_to_vmem [thread:$0]  %s1718_s0, 128, %s25_s18, [#allocation7]  }
  0x11   :  { %1378 = dma.done.wait [#allocation7], 128  }
  0x12   :  { %1379 = vsyncadd [#allocation7], 4294967168  ;;  %s1395_s29 = smov [#allocation4]   ;;  %s1396_s12 = smov [#allocation4 + $0x100]  }
  0x13   :  { %s48_s30 = sshll.u32 %s1395_s29, 4  ;;  %s55_s13 = sshll.u32 %s1396_s12, 4  ;;  %s1476_s30 = int_to_ptr.vmem [resolvable:$true] %s48_s30  ;;  %s1478_s13 = int_to_ptr.vmem [resolvable:$true] %s55_s13 }
  0x14   :  { %s1221_s16 = scalar_lea.hbm %s1719_s1, 2048 }
  0x15   :  { %p1222_p8 = scmp.ne.s32.totalorder %s1719_s1, %s1221_s16  ;;  %p1225_p9 = scmp.lt.u32.totalorder %s1221_s16, %s1719_s1 }
  0x17   :  { %p1227_p10 = pnand %p1225_p9, %p1222_p8 }
  0x19   :  { %1230 = shalt.err (!%p1227_p10)  }
  0x1a   :  { %s1231_s18 = scalar_lea.vmem %s1476_s30, 2048  ;;  %s1492_s21 = scalar_lea.vmem %s1476_s30, 8192 }
  0x1b   :  { %p1232_p11 = scmp.ne.s32.totalorder %s1476_s30, %s1231_s18  ;;  %p1236_p12 = scmp.lt.s32.totalorder %s1476_s30, %s1476_s30 }
  0x1c   :  { %p1237_p13 = scmp.lt.s32.totalorder %s1492_s21, %s1231_s18 }
  0x1e   :  { %p1238_p0 = por %p1237_p13, %p1236_p12 }
  0x20   :  { %p1497_p1 = pnand %p1238_p0, %p1232_p11 }
  0x22   :  { %1242 = shalt.err (!%p1497_p1)  }
  0x23   :  { %51 = dma.hbm_to_vmem [thread:$0]  %s1719_s1, 2048, %s1476_s30, [#allocation5] }
  0x24   :  { %s1243_s27 = scalar_lea.hbm %s1721_s3, 2048  ;;  %s1245_s15 = scalar_lea.hbm %s1721_s3, 4096 }
  0x25   :  { %p1244_p2 = scmp.ne.s32.totalorder %s1721_s3, %s1243_s27  ;;  %p1246_p3 = scmp.lt.u32.totalorder %s1245_s15, %s1243_s27 }
  0x26   :  { %p1247_p4 = scmp.lt.u32.totalorder %s1243_s27, %s1721_s3 }
  0x28   :  { %p1248_p5 = por %p1247_p4, %p1246_p3 }
  0x2a   :  { %p1249_p6 = pnand %p1248_p5, %p1244_p2 }
  0x2c   :  { %1252 = shalt.err (!%p1249_p6)  }
  0x2d   :  { %s1253_s1 = scalar_lea.vmem %s1478_s13, 2048  ;;  %p1258_p8 = scmp.lt.s32.totalorder %s1478_s13, %s1476_s30 }
  0x2e   :  { %p1525_p7 = scmp.ne.s32.totalorder %s1478_s13, %s1253_s1  ;;  %p1259_p9 = scmp.lt.s32.totalorder %s1492_s21, %s1253_s1 }
  0x30   :  { %p1535_p10 = por %p1259_p9, %p1258_p8 }
  0x32   :  { %p1261_p11 = pnand %p1535_p10, %p1525_p7 }
  0x34   :  { %1264 = shalt.err (!%p1261_p11)  }
  0x35   :  { %s1397_s23 = smov 256   ;;  %s1398_s24 = smov 128  }
  0x36   :  { %s1399_s25 = smov 8  }
  0x37   :  { %58 = dma.hbm_to_vmem [thread:$0]  %s1721_s3, 2048, %s1478_s13, [#allocation5 + $0x1], %s1397_s23, %s1398_s24, %s1399_s25 }
  0x38   :  { %1380 = dma.done.wait [#allocation5], 2048 }
  0x39   :  { %1381 = vsyncadd [#allocation5], 4294965248  ;;  %v1400_v0 = vmov 0.0|0.0   ;;  %vm1401_vm0 = vmmov 0   ;;  %v1402_v1 = vmov 0.0   ;;  %v63_v2 = vld [vmem:[#allocation4] sm:$0xff] }
  0x3a   :  { %1037 = vmatprep.subr.bf16.mxu0 %v1400_v0  ;;  %894 = vmatprep.mubr.msk.f32.mxu0 %vm1401_vm0, %v1402_v1  ;;  %v64_v3 = vld [vmem:[#allocation4 + $0x8] sm:$0xff]  ;;  %v65_v4 = vld [vmem:[#allocation4 + $0x10] sm:$0xff]  ;;  %v66_v6 = vld [vmem:[#allocation4 + $0x18] sm:$0xff]  ;;  %s158_s12 = scalar_lea.hbm %s1721_s3, 128  ;;  %s1289_s17 = scalar_lea.hbm %s1721_s3, 2176 }
  0x3b   :  { %v1038_v5 = vpack.c.bf16 %v64_v3, %v63_v2  ;;  %v1041_v7 = vpack.c.bf16 %v66_v6, %v65_v4  ;;  %v67_v8 = vld [vmem:[#allocation4 + $0x20] sm:$0xff]  ;;  %v68_v9 = vld [vmem:[#allocation4 + $0x28] sm:$0xff]  ;;  %v69_v11 = vld [vmem:[#allocation4 + $0x30] sm:$0xff]  ;;  %p1266_p12 = scmp.ne.s32.totalorder %s158_s12, %s1289_s17  ;;  %p1268_p13 = scmp.lt.u32.totalorder %s158_s12, %s1721_s3 }
  0x3c   :  { %v1044_v10 = vpack.c.bf16 %v68_v9, %v67_v8  ;;  %v70_v12 = vld [vmem:[#allocation4 + $0x38] sm:$0xff]  ;;  %v71_v14 = vld [vmem:[#allocation4 + $0x40] sm:$0xff]  ;;  %v72_v15 = vld [vmem:[#allocation4 + $0x48] sm:$0xff]  ;;  %p1269_p0 = scmp.lt.u32.totalorder %s1245_s15, %s1289_s17  ;;  %p1271_p3 = scmp.lt.u32.totalorder %s1289_s17, %s158_s12 }
  0x3d   :  { %1039 = vmatpush3.bf16.msra.mxu0 %v1038_v5  ;;  %v1047_v13 = vpack.c.bf16 %v70_v12, %v69_v11  ;;  %v1050_v16 = vpack.c.bf16 %v72_v15, %v71_v14  ;;  %v73_v17 = vld [vmem:[#allocation4 + $0x50] sm:$0xff]  ;;  %v74_v18 = vld [vmem:[#allocation4 + $0x58] sm:$0xff]  ;;  %v75_v20 = vld [vmem:[#allocation4 + $0x60] sm:$0xff] }
  0x3e   :  { %1040 = vmatprep.subr.bf16.mxu0 %v1400_v0  ;;  %v1053_v19 = vpack.c.bf16 %v74_v18, %v73_v17  ;;  %v76_v21 = vld [vmem:[#allocation4 + $0x68] sm:$0xff]  ;;  %v77_v23 = vld [vmem:[#allocation4 + $0x70] sm:$0xff]  ;;  %v78_v24 = vld [vmem:[#allocation4 + $0x78] sm:$0xff]  ;;  %p1270_p2 = por %p1269_p0, %p1268_p13 }
  0x3f   :  { %v1056_v22 = vpack.c.bf16 %v76_v21, %v75_v20  ;;  %v1059_v25 = vpack.c.bf16 %v78_v24, %v77_v23  ;;  %v62_v26 = vld [vmem:[#allocation6] sm:$0xff] }
  0x40   :  { %p1272_p4 = por %p1271_p3, %p1270_p2 }
  0x41   :  { %1042 = vmatpush3.bf16.msra.mxu0 %v1041_v7 }
  0x42   :  { %1043 = vmatprep.subr.bf16.mxu0 %v1400_v0  ;;  %p1273_p5 = pnand %p1272_p4, %p1266_p12 }
  0x45   :  { %1045 = vmatpush3.bf16.msra.mxu0 %v1044_v10 }
  0x46   :  { %1046 = vmatprep.subr.bf16.mxu0 %v1400_v0 }
  0x49   :  { %1048 = vmatpush3.bf16.msra.mxu0 %v1047_v13 }
  0x4a   :  { %1049 = vmatprep.subr.bf16.mxu0 %v1400_v0 }
  0x4d   :  { %1051 = vmatpush3.bf16.msra.mxu0 %v1050_v16 }
  0x4e   :  { %1052 = vmatprep.subr.bf16.mxu0 %v1400_v0 }
  0x51   :  { %1054 = vmatpush3.bf16.msra.mxu0 %v1053_v19 }
  0x52   :  { %1055 = vmatprep.subr.bf16.mxu0 %v1400_v0 }
  0x55   :  { %1057 = vmatpush3.bf16.msra.mxu0 %v1056_v22 }
  0x56   :  { %1058 = vmatprep.subr.bf16.mxu0 %v1400_v0 }
  0x59   :  { %1060 = vmatpush3.bf16.msra.mxu0 %v1059_v25 }
  0x5c   :  { %895 = vmatmul.mubr.f32.vlgmr.msra.gmra.mrb[0].mxu0 %v62_v26 }
  0x5d   :  { %1276 = shalt.err (!%p1273_p5)  }
  0x5e   :  { %1288 = shalt.err (!%p1497_p1)  }
  0x5f   :  { %163 = dma.hbm_to_vmem [thread:$0]  %s158_s12, 2048, %s1476_s30, [#allocation5], %s1397_s23, %s1398_s24, %s1399_s25 }
  0x60   :  { %v734_v27 = vld [vmem:[%s1720_s2] ss:$0 sm:$0xff] }
 0x12f   :  { %v152_v28 = vpop.f32.mrb[0].mxu0 }
 0x130   :  { %v1587_v29 = vadd.f32 %v734_v27, %v152_v28  ;;  %v896_v30 = vpop.f32.mrb[1].mxu0 }
 0x132   :  { %v156_v31 = vmax.f32 %v1587_v29, 0.0 }
 0x133   :  { %1382 = dma.done.wait [#allocation5 + $0x1], 2048 }
 0x134   :  { %1383 = vsyncadd [#allocation5 + $0x1], 4294965248  ;;  %1061 = vmatprep.subr.bf16.mxu1 %v1400_v0  ;;  %929 = vmatprep.mubr.msk.f32.mxu1 %vm1401_vm0, %v1402_v1  ;;  %v169_v32 = vld [vmem:[#allocation4 + $0x100] sm:$0xff]  ;;  %v170_v33 = vld [vmem:[#allocation4 + $0x108] sm:$0xff]  ;;  %s1290_s15 = scalar_lea.hbm %s1723_s5, 4096 }
 0x135   :  { %v171_v34 = vld [vmem:[#allocation4 + $0x110] sm:$0xff]  ;;  %v1062_v35 = vpack.c.bf16 %v170_v33, %v169_v32  ;;  %v172_v36 = vld [vmem:[#allocation4 + $0x118] sm:$0xff]  ;;  %v173_v37 = vld [vmem:[#allocation4 + $0x120] sm:$0xff]  ;;  %p1291_p6 = scmp.ne.s32.totalorder %s1723_s5, %s1290_s15  ;;  %p1294_p9 = scmp.lt.u32.totalorder %s1290_s15, %s1723_s5 }
 0x136   :  { %v174_v38 = vld [vmem:[#allocation4 + $0x128] sm:$0xff]  ;;  %v1065_v39 = vpack.c.bf16 %v172_v36, %v171_v34  ;;  %v175_v40 = vld [vmem:[#allocation4 + $0x130] sm:$0xff]  ;;  %v176_v41 = vld [vmem:[#allocation4 + $0x138] sm:$0xff] }
 0x137   :  { %1063 = vmatpush3.bf16.msra.mxu1 %v1062_v35  ;;  %v177_v42 = vld [vmem:[#allocation4 + $0x140] sm:$0xff]  ;;  %v178_v43 = vld [vmem:[#allocation4 + $0x148] sm:$0xff]  ;;  %v179_v44 = vld [vmem:[#allocation4 + $0x150] sm:$0xff]  ;;  %p1296_p12 = pnand %p1294_p9, %p1291_p6 }
 0x138   :  { %1064 = vmatprep.subr.bf16.mxu1 %v1400_v0  ;;  %v180_v45 = vld [vmem:[#allocation4 + $0x158] sm:$0xff]  ;;  %v181_v46 = vld [vmem:[#allocation4 + $0x160] sm:$0xff]  ;;  %v182_v47 = vld [vmem:[#allocation4 + $0x168] sm:$0xff] }
 0x139   :  { %v183_v48 = vld [vmem:[#allocation4 + $0x170] sm:$0xff]  ;;  %v184_v49 = vld [vmem:[#allocation4 + $0x178] sm:$0xff] }
 0x13a   :  { %1299 = shalt.err (!%p1296_p12)  }
 0x13b   :  { %s1300_s12 = scalar_lea.vmem %s1478_s13, 4096 }
 0x13c   :  { %p1301_p13 = scmp.ne.s32.totalorder %s1478_s13, %s1300_s12  ;;  %p1306_p0 = scmp.lt.s32.totalorder %s1492_s21, %s1300_s12 }
 0x13e   :  { %p1307_p2 = por %p1306_p0, %p1258_p8 }
 0x140   :  { %p1308_p3 = pnand %p1307_p2, %p1301_p13 }
 0x142   :  { %1311 = shalt.err (!%p1308_p3)  }
 0x143   :  { %274 = dma.hbm_to_vmem [thread:$0]  %s1723_s5, 4096, %s1478_s13, [#allocation5 + $0x1]  ;;  %1066 = vmatpush3.bf16.msra.mxu1 %v1065_v39  ;;  %v1068_v50 = vpack.c.bf16 %v174_v38, %v173_v37  ;;  %v1071_v51 = vpack.c.bf16 %v176_v41, %v175_v40  ;;  %v1074_v52 = vpack.c.bf16 %v178_v43, %v177_v42  ;;  %v1077_v53 = vpack.c.bf16 %v180_v45, %v179_v44  ;;  %v735_v56 = vld [vmem:[%s1722_s4] ss:$0 sm:$0xff] }
 0x144   :  { %1067 = vmatprep.subr.bf16.mxu1 %v1400_v0  ;;  %v1080_v54 = vpack.c.bf16 %v182_v47, %v181_v46  ;;  %v1083_v55 = vpack.c.bf16 %v184_v49, %v183_v48 }
 0x147   :  { %1069 = vmatpush3.bf16.msra.mxu1 %v1068_v50 }
 0x148   :  { %1070 = vmatprep.subr.bf16.mxu1 %v1400_v0 }
 0x14b   :  { %1072 = vmatpush3.bf16.msra.mxu1 %v1071_v51 }
 0x14c   :  { %1073 = vmatprep.subr.bf16.mxu1 %v1400_v0 }
 0x14f   :  { %1075 = vmatpush3.bf16.msra.mxu1 %v1074_v52 }
 0x150   :  { %1076 = vmatprep.subr.bf16.mxu1 %v1400_v0 }
 0x153   :  { %1078 = vmatpush3.bf16.msra.mxu1 %v1077_v53 }
 0x154   :  { %1079 = vmatprep.subr.bf16.mxu1 %v1400_v0 }
 0x157   :  { %1081 = vmatpush3.bf16.msra.mxu1 %v1080_v54 }
 0x158   :  { %1082 = vmatprep.subr.bf16.mxu1 %v1400_v0 }
 0x15b   :  { %1084 = vmatpush3.bf16.msra.mxu1 %v1083_v55 }
 0x15e   :  { %930 = vmatmul.mubr.f32.vlgmr.msra.gmra.mrb[0].mxu1 %v156_v31 }
 0x231   :  { %v258_v57 = vpop.f32.mrb[0].mxu1 }
 0x232   :  { %v1624_v58 = vadd.f32 %v735_v56, %v258_v57  ;;  %v931_v59 = vpop.f32.mrb[1].mxu1 }
 0x234   :  { %v262_v60 = vmax.f32 %v1624_v58, 0.0 }
 0x235   :  { %1384 = dma.done.wait [#allocation5], 2048 }
 0x236   :  { %1385 = vsyncadd [#allocation5], 4294965248  ;;  %1085 = vmatprep.subr.bf16.mxu0 %v1400_v0  ;;  %964 = vmatprep.mubr.msk.f32.mxu0 %vm1401_vm0, %v1402_v1  ;;  %v278_v61 = vld [vmem:[#allocation4] sm:$0xff]  ;;  %v279_v62 = vld [vmem:[#allocation4 + $0x8] sm:$0xff]  ;;  %s1312_s20 = scalar_lea.hbm %s1725_s7, 2048 }
 0x237   :  { %v280_v63 = vld [vmem:[#allocation4 + $0x10] sm:$0xff]  ;;  %v1086_v2 = vpack.c.bf16 %v279_v62, %v278_v61  ;;  %v281_v3 = vld [vmem:[#allocation4 + $0x18] sm:$0xff]  ;;  %v282_v4 = vld [vmem:[#allocation4 + $0x20] sm:$0xff]  ;;  %p1313_p8 = scmp.ne.s32.totalorder %s1725_s7, %s1312_s20  ;;  %p1316_p4 = scmp.lt.u32.totalorder %s1312_s20, %s1725_s7 }
 0x238   :  { %v283_v5 = vld [vmem:[#allocation4 + $0x28] sm:$0xff]  ;;  %v1089_v6 = vpack.c.bf16 %v281_v3, %v280_v63  ;;  %v284_v7 = vld [vmem:[#allocation4 + $0x30] sm:$0xff]  ;;  %v285_v8 = vld [vmem:[#allocation4 + $0x38] sm:$0xff] }
 0x239   :  { %1087 = vmatpush3.bf16.msra.mxu0 %v1086_v2  ;;  %v286_v9 = vld [vmem:[#allocation4 + $0x40] sm:$0xff]  ;;  %v287_v10 = vld [vmem:[#allocation4 + $0x48] sm:$0xff]  ;;  %v288_v11 = vld [vmem:[#allocation4 + $0x50] sm:$0xff]  ;;  %p1318_p5 = pnand %p1316_p4, %p1313_p8 }
 0x23a   :  { %1088 = vmatprep.subr.bf16.mxu0 %v1400_v0  ;;  %v289_v12 = vld [vmem:[#allocation4 + $0x58] sm:$0xff]  ;;  %v290_v13 = vld [vmem:[#allocation4 + $0x60] sm:$0xff]  ;;  %v291_v14 = vld [vmem:[#allocation4 + $0x68] sm:$0xff] }
 0x23b   :  { %v292_v15 = vld [vmem:[#allocation4 + $0x70] sm:$0xff]  ;;  %v293_v16 = vld [vmem:[#allocation4 + $0x78] sm:$0xff] }
 0x23c   :  { %1321 = shalt.err (!%p1318_p5)  }
 0x23d   :  { %1333 = shalt.err (!%p1497_p1)  }
 0x23e   :  { %383 = dma.hbm_to_vmem [thread:$0]  %s1725_s7, 2048, %s1476_s30, [#allocation5]  ;;  %1090 = vmatpush3.bf16.msra.mxu0 %v1089_v6  ;;  %v1092_v17 = vpack.c.bf16 %v283_v5, %v282_v4  ;;  %v1095_v18 = vpack.c.bf16 %v285_v8, %v284_v7  ;;  %v1098_v19 = vpack.c.bf16 %v287_v10, %v286_v9  ;;  %v1101_v20 = vpack.c.bf16 %v289_v12, %v288_v11  ;;  %v736_v23 = vld [vmem:[%s1722_s4 + $0x1] ss:$0 sm:$0xff] }
 0x23f   :  { %1091 = vmatprep.subr.bf16.mxu0 %v1400_v0  ;;  %v1104_v21 = vpack.c.bf16 %v291_v14, %v290_v13  ;;  %v1107_v22 = vpack.c.bf16 %v293_v16, %v292_v15 }
 0x242   :  { %1093 = vmatpush3.bf16.msra.mxu0 %v1092_v17 }
 0x243   :  { %1094 = vmatprep.subr.bf16.mxu0 %v1400_v0 }
 0x246   :  { %1096 = vmatpush3.bf16.msra.mxu0 %v1095_v18 }
 0x247   :  { %1097 = vmatprep.subr.bf16.mxu0 %v1400_v0 }
 0x24a   :  { %1099 = vmatpush3.bf16.msra.mxu0 %v1098_v19 }
 0x24b   :  { %1100 = vmatprep.subr.bf16.mxu0 %v1400_v0 }
 0x24e   :  { %1102 = vmatpush3.bf16.msra.mxu0 %v1101_v20 }
 0x24f   :  { %1103 = vmatprep.subr.bf16.mxu0 %v1400_v0 }
 0x252   :  { %1105 = vmatpush3.bf16.msra.mxu0 %v1104_v21 }
 0x253   :  { %1106 = vmatprep.subr.bf16.mxu0 %v1400_v0 }
 0x256   :  { %1108 = vmatpush3.bf16.msra.mxu0 %v1107_v22 }
 0x259   :  { %965 = vmatmul.mubr.f32.vlgmr.msra.gmra.mrb[2].mxu0 %v156_v31 }
 0x32c   :  { %v367_v24 = vpop.f32.mrb[2].mxu0 }
 0x32d   :  { %v368_v25 = vadd.f32 %v736_v23, %v367_v24  ;;  %v966_v26 = vpop.f32.mrb[3].mxu0 }
 0x32f   :  { %v371_v27 = vmax.f32 %v368_v25, 0.0 }
 0x330   :  { %1386 = dma.done.wait [#allocation5 + $0x1], 4096 }
 0x331   :  { %1387 = vsyncadd [#allocation5 + $0x1], 4294963200  ;;  %492 = vmatprep.mubr.f32.mxu1 %v371_v27  ;;  %v405_v28 = vld [vmem:[#allocation4 + $0x180] sm:$0xff]  ;;  %v406_v30 = vld [vmem:[#allocation4 + $0x188] sm:$0xff]  ;;  %s1334_s15 = scalar_lea.hbm %s1727_s9, 2048 }
 0x332   :  { %v389_v32 = vld [vmem:[#allocation4 + $0x100] sm:$0xff]  ;;  %v1109_v33 = vpack.c.bf16 %v406_v30, %v405_v28  ;;  %v390_v34 = vld [vmem:[#allocation4 + $0x108] sm:$0xff]  ;;  %v407_v35 = vld [vmem:[#allocation4 + $0x190] sm:$0xff]  ;;  %p1335_p1 = scmp.ne.s32.totalorder %s1727_s9, %s1334_s15  ;;  %p1338_p6 = scmp.lt.u32.totalorder %s1334_s15, %s1727_s9 }
 0x333   :  { %v408_v36 = vld [vmem:[#allocation4 + $0x198] sm:$0xff]  ;;  %v1111_v29 = vpack.c.bf16 %v390_v34, %v389_v32  ;;  %v391_v37 = vld [vmem:[#allocation4 + $0x110] sm:$0xff]  ;;  %v409_v39 = vld [vmem:[#allocation4 + $0x1a0] sm:$0xff] }
 0x334   :  { %v1113_v31 = vpack.c.bf16 %v408_v36, %v407_v35  ;;  %v392_v38 = vld [vmem:[#allocation4 + $0x118] sm:$0xff]  ;;  %1110 = vmatprep.subr.bf16.mxu1 %v1109_v33  ;;  %v410_v40 = vld [vmem:[#allocation4 + $0x1a8] sm:$0xff]  ;;  %v393_v43 = vld [vmem:[#allocation4 + $0x120] sm:$0xff]  ;;  %p1340_p9 = pnand %p1338_p6, %p1335_p1 }
 0x335   :  { %1112 = vmatpush3.bf16.msra.mxu1 %v1111_v29  ;;  %v1115_v41 = vpack.c.bf16 %v392_v38, %v391_v37  ;;  %v1117_v42 = vpack.c.bf16 %v410_v40, %v409_v39  ;;  %v394_v44 = vld [vmem:[#allocation4 + $0x128] sm:$0xff]  ;;  %v411_v45 = vld [vmem:[#allocation4 + $0x1b0] sm:$0xff]  ;;  %v412_v46 = vld [vmem:[#allocation4 + $0x1b8] sm:$0xff] }
 0x336   :  { %1114 = vmatprep.subr.bf16.mxu1 %v1113_v31  ;;  %v395_v47 = vld [vmem:[#allocation4 + $0x130] sm:$0xff]  ;;  %v396_v48 = vld [vmem:[#allocation4 + $0x138] sm:$0xff]  ;;  %v1119_v49 = vpack.c.bf16 %v394_v44, %v393_v43  ;;  %v413_v50 = vld [vmem:[#allocation4 + $0x1c0] sm:$0xff]  ;;  %v1121_v62 = vpack.c.bf16 %v412_v46, %v411_v45 }
 0x337   :  { %v414_v51 = vld [vmem:[#allocation4 + $0x1c8] sm:$0xff]  ;;  %v397_v52 = vld [vmem:[#allocation4 + $0x140] sm:$0xff]  ;;  %v415_v54 = vld [vmem:[#allocation4 + $0x1d0] sm:$0xff] }
 0x338   :  { %v398_v53 = vld [vmem:[#allocation4 + $0x148] sm:$0xff]  ;;  %v416_v55 = vld [vmem:[#allocation4 + $0x1d8] sm:$0xff]  ;;  %v399_v56 = vld [vmem:[#allocation4 + $0x150] sm:$0xff] }
 0x339   :  { %1116 = vmatpush3.bf16.msra.mxu1 %v1115_v41  ;;  %v400_v57 = vld [vmem:[#allocation4 + $0x158] sm:$0xff]  ;;  %v417_v59 = vld [vmem:[#allocation4 + $0x1e0] sm:$0xff]  ;;  %v418_v61 = vld [vmem:[#allocation4 + $0x1e8] sm:$0xff] }
 0x33a   :  { %1118 = vmatprep.subr.bf16.mxu1 %v1117_v42  ;;  %v401_v63 = vld [vmem:[#allocation4 + $0x160] sm:$0xff]  ;;  %v402_v2 = vld [vmem:[#allocation4 + $0x168] sm:$0xff]  ;;  %v419_v3 = vld [vmem:[#allocation4 + $0x1f0] sm:$0xff] }
 0x33b   :  { %v420_v4 = vld [vmem:[#allocation4 + $0x1f8] sm:$0xff]  ;;  %v403_v5 = vld [vmem:[#allocation4 + $0x170] sm:$0xff] }
 0x33c   :  { %v404_v6 = vld [vmem:[#allocation4 + $0x178] sm:$0xff] }
 0x33d   :  { %1343 = shalt.err (!%p1340_p9)  }
 0x33e   :  { %1355 = shalt.err (!%p1261_p11)  }
 0x33f   :  { %510 = dma.hbm_to_vmem [thread:$0]  %s1727_s9, 2048, %s1478_s13, [#allocation5 + $0x1]  ;;  %1120 = vmatpush3.bf16.msra.mxu1 %v1119_v49  ;;  %v1123_v7 = vpack.c.bf16 %v396_v48, %v395_v47  ;;  %v1125_v8 = vpack.c.bf16 %v414_v51, %v413_v50  ;;  %v1127_v9 = vpack.c.bf16 %v398_v53, %v397_v52  ;;  %v1129_v10 = vpack.c.bf16 %v416_v55, %v415_v54  ;;  %v737_v17 = vld [vmem:[%s1724_s6] ss:$0 sm:$0xff] }
 0x340   :  { %1122 = vmatprep.subr.bf16.mxu1 %v1121_v62  ;;  %v1131_v11 = vpack.c.bf16 %v400_v57, %v399_v56  ;;  %v1133_v12 = vpack.c.bf16 %v418_v61, %v417_v59  ;;  %v1135_v13 = vpack.c.bf16 %v402_v2, %v401_v63  ;;  %v1137_v14 = vpack.c.bf16 %v420_v4, %v419_v3 }
 0x341   :  { %v1139_v15 = vpack.c.bf16 %v404_v6, %v403_v5 }
 0x343   :  { %1124 = vmatpush3.bf16.msra.mxu1 %v1123_v7 }
 0x344   :  { %1126 = vmatprep.subr.bf16.mxu1 %v1125_v8 }
 0x347   :  { %1128 = vmatpush3.bf16.msra.mxu1 %v1127_v9 }
 0x348   :  { %1130 = vmatprep.subr.bf16.mxu1 %v1129_v10 }
 0x34b   :  { %1132 = vmatpush3.bf16.msra.mxu1 %v1131_v11 }
 0x34c   :  { %1134 = vmatprep.subr.bf16.mxu1 %v1133_v12 }
 0x34f   :  { %1136 = vmatpush3.bf16.msra.mxu1 %v1135_v13 }
 0x350   :  { %1138 = vmatprep.subr.bf16.mxu1 %v1137_v14 }
 0x353   :  { %1140 = vmatpush3.bf16.msra.mxu1 %v1139_v15 }
 0x356   :  { %493 = vmatmul.mubr.f32.vlgmr.msra.gmra.mrb[2].mxu1 %v262_v60 }
 0x429   :  { %v825_v16 = vpop.f32.mrb[2].mxu1 }
 0x42a   :  { %v826_v18 = vpop.f32.mrb[3].mxu1 }
 0x42b   :  { %v827_v19 = vadd.f32 %v826_v18, %v825_v16 }
 0x42d   :  { %v495_v20 = vadd.f32 %v827_v19, %v737_v17 }
 0x42f   :  { %v498_v21 = vmax.f32 %v495_v20, 0.0 }
 0x430   :  { %1388 = dma.done.wait [#allocation5], 2048 }
 0x431   :  { %1389 = vsyncadd [#allocation5], 4294965248  ;;  %1141 = vmatprep.subr.bf16.mxu0 %v1400_v0  ;;  %999 = vmatprep.mubr.msk.f32.mxu0 %vm1401_vm0, %v1402_v1  ;;  %v514_v22 = vld [vmem:[#allocation4] sm:$0xff]  ;;  %v515_v23 = vld [vmem:[#allocation4 + $0x8] sm:$0xff] }
 0x432   :  { %v516_v58 = vld [vmem:[#allocation4 + $0x10] sm:$0xff]  ;;  %v1142_v60 = vpack.c.bf16 %v515_v23, %v514_v22  ;;  %v517_v24 = vld [vmem:[#allocation4 + $0x18] sm:$0xff]  ;;  %v518_v26 = vld [vmem:[#allocation4 + $0x20] sm:$0xff] }
 0x433   :  { %v1145_v25 = vpack.c.bf16 %v517_v24, %v516_v58  ;;  %v519_v27 = vld [vmem:[#allocation4 + $0x28] sm:$0xff]  ;;  %v520_v30 = vld [vmem:[#allocation4 + $0x30] sm:$0xff]  ;;  %v521_v32 = vld [vmem:[#allocation4 + $0x38] sm:$0xff] }
 0x434   :  { %1143 = vmatpush3.bf16.msra.mxu0 %v1142_v60  ;;  %v1148_v28 = vpack.c.bf16 %v519_v27, %v518_v26  ;;  %v1151_v33 = vpack.c.bf16 %v521_v32, %v520_v30  ;;  %v522_v34 = vld [vmem:[#allocation4 + $0x40] sm:$0xff]  ;;  %v523_v35 = vld [vmem:[#allocation4 + $0x48] sm:$0xff]  ;;  %v524_v29 = vld [vmem:[#allocation4 + $0x50] sm:$0xff] }
 0x435   :  { %1144 = vmatprep.subr.bf16.mxu0 %v1400_v0  ;;  %v1154_v36 = vpack.c.bf16 %v523_v35, %v522_v34  ;;  %v525_v31 = vld [vmem:[#allocation4 + $0x58] sm:$0xff]  ;;  %v526_v38 = vld [vmem:[#allocation4 + $0x60] sm:$0xff]  ;;  %v527_v39 = vld [vmem:[#allocation4 + $0x68] sm:$0xff] }
 0x436   :  { %v1157_v37 = vpack.c.bf16 %v525_v31, %v524_v29  ;;  %v1160_v40 = vpack.c.bf16 %v527_v39, %v526_v38  ;;  %v528_v41 = vld [vmem:[#allocation4 + $0x70] sm:$0xff]  ;;  %v529_v42 = vld [vmem:[#allocation4 + $0x78] sm:$0xff]  ;;  %v738_v44 = vld [vmem:[%s1726_s8] ss:$0 sm:$0xff] }
 0x437   :  { %v1163_v43 = vpack.c.bf16 %v529_v42, %v528_v41 }
 0x438   :  { %1146 = vmatpush3.bf16.msra.mxu0 %v1145_v25 }
 0x439   :  { %1147 = vmatprep.subr.bf16.mxu0 %v1400_v0 }
 0x43c   :  { %1149 = vmatpush3.bf16.msra.mxu0 %v1148_v28 }
 0x43d   :  { %1150 = vmatprep.subr.bf16.mxu0 %v1400_v0 }
 0x440   :  { %1152 = vmatpush3.bf16.msra.mxu0 %v1151_v33 }
 0x441   :  { %1153 = vmatprep.subr.bf16.mxu0 %v1400_v0 }
 0x444   :  { %1155 = vmatpush3.bf16.msra.mxu0 %v1154_v36 }
 0x445   :  { %1156 = vmatprep.subr.bf16.mxu0 %v1400_v0 }
 0x448   :  { %1158 = vmatpush3.bf16.msra.mxu0 %v1157_v37 }
 0x449   :  { %1159 = vmatprep.subr.bf16.mxu0 %v1400_v0 }
 0x44c   :  { %1161 = vmatpush3.bf16.msra.mxu0 %v1160_v40 }
 0x44d   :  { %1162 = vmatprep.subr.bf16.mxu0 %v1400_v0 }
 0x450   :  { %1164 = vmatpush3.bf16.msra.mxu0 %v1163_v43 }
 0x453   :  { %1000 = vmatmul.mubr.f32.vlgmr.msra.gmra.mrb[4].mxu0 %v498_v21 }
 0x526   :  { %v603_v45 = vpop.f32.mrb[4].mxu0 }
 0x527   :  { %v604_v46 = vadd.f32 %v738_v44, %v603_v45  ;;  %v1001_v47 = vpop.f32.mrb[5].mxu0 }
 0x529   :  { %v607_v48 = vmax.f32 %v604_v46, 0.0 }
 0x52a   :  { %1390 = dma.done.wait [#allocation5 + $0x1], 2048 }
 0x52b   :  { %1391 = vsyncadd [#allocation5 + $0x1], 4294965248  ;;  %1165 = vmatprep.subr.bf16.mxu1 %v1400_v0  ;;  %1034 = vmatprep.mubr.msk.f32.mxu1 %vm1401_vm0, %v1402_v1  ;;  %v612_v49 = vld [vmem:[#allocation4 + $0x100] sm:$0xff]  ;;  %v613_v50 = vld [vmem:[#allocation4 + $0x108] sm:$0xff]  ;;  %s1403_s16 = smov [#allocation9]  }
 0x52c   :  { %v614_v51 = vld [vmem:[#allocation4 + $0x110] sm:$0xff]  ;;  %v1166_v52 = vpack.c.bf16 %v613_v50, %v612_v49  ;;  %v615_v53 = vld [vmem:[#allocation4 + $0x118] sm:$0xff]  ;;  %v616_v55 = vld [vmem:[#allocation4 + $0x120] sm:$0xff]  ;;  %s712_s5 = sshll.u32 %s1403_s16, 4  ;;  %s713_s5 = int_to_ptr.vmem [resolvable:$true] %s712_s5 }
 0x52d   :  { %v1169_v54 = vpack.c.bf16 %v615_v53, %v614_v51  ;;  %v617_v56 = vld [vmem:[#allocation4 + $0x128] sm:$0xff]  ;;  %v618_v59 = vld [vmem:[#allocation4 + $0x130] sm:$0xff]  ;;  %v619_v61 = vld [vmem:[#allocation4 + $0x138] sm:$0xff]  ;;  %s1356_s21 = scalar_lea.vmem %s713_s5, 128  ;;  %p1361_p10 = scmp.lt.s32.totalorder %s713_s5, %s713_s5 }
 0x52e   :  { %1167 = vmatpush3.bf16.msra.mxu1 %v1166_v52  ;;  %v1172_v57 = vpack.c.bf16 %v617_v56, %v616_v55  ;;  %v1175_v62 = vpack.c.bf16 %v619_v61, %v618_v59  ;;  %v620_v1 = vld [vmem:[#allocation4 + $0x140] sm:$0xff]  ;;  %v621_v63 = vld [vmem:[#allocation4 + $0x148] sm:$0xff]  ;;  %v622_v3 = vld [vmem:[#allocation4 + $0x150] sm:$0xff]  ;;  %p1357_p7 = scmp.ne.s32.totalorder %s713_s5, %s1356_s21  ;;  %p1362_p11 = scmp.lt.s32.totalorder %s1356_s21, %s1356_s21 }
 0x52f   :  { %1168 = vmatprep.subr.bf16.mxu1 %v1400_v0  ;;  %v1178_v2 = vpack.c.bf16 %v621_v63, %v620_v1  ;;  %v623_v4 = vld [vmem:[#allocation4 + $0x158] sm:$0xff]  ;;  %v624_v6 = vld [vmem:[#allocation4 + $0x160] sm:$0xff]  ;;  %v625_v7 = vld [vmem:[#allocation4 + $0x168] sm:$0xff] }
 0x530   :  { %v1181_v5 = vpack.c.bf16 %v623_v4, %v622_v3  ;;  %v1184_v8 = vpack.c.bf16 %v625_v7, %v624_v6  ;;  %v626_v9 = vld [vmem:[#allocation4 + $0x170] sm:$0xff]  ;;  %v627_v10 = vld [vmem:[#allocation4 + $0x178] sm:$0xff]  ;;  %v739_v12 = vld [vmem:[%s1728_s10] ss:$0 sm:$0xff]  ;;  %p1363_p12 = por %p1362_p11, %p1361_p10 }
 0x531   :  { %v1187_v11 = vpack.c.bf16 %v627_v10, %v626_v9 }
 0x532   :  { %1170 = vmatpush3.bf16.msra.mxu1 %v1169_v54  ;;  %p1364_p13 = pnand %p1363_p12, %p1357_p7 }
 0x533   :  { %1171 = vmatprep.subr.bf16.mxu1 %v1400_v0 }
 0x536   :  { %1173 = vmatpush3.bf16.msra.mxu1 %v1172_v57 }
 0x537   :  { %1174 = vmatprep.subr.bf16.mxu1 %v1400_v0 }
 0x53a   :  { %1176 = vmatpush3.bf16.msra.mxu1 %v1175_v62 }
 0x53b   :  { %1177 = vmatprep.subr.bf16.mxu1 %v1400_v0 }
 0x53e   :  { %1179 = vmatpush3.bf16.msra.mxu1 %v1178_v2 }
 0x53f   :  { %1180 = vmatprep.subr.bf16.mxu1 %v1400_v0 }
 0x542   :  { %1182 = vmatpush3.bf16.msra.mxu1 %v1181_v5 }
 0x543   :  { %1183 = vmatprep.subr.bf16.mxu1 %v1400_v0 }
 0x546   :  { %1185 = vmatpush3.bf16.msra.mxu1 %v1184_v8 }
 0x547   :  { %1186 = vmatprep.subr.bf16.mxu1 %v1400_v0 }
 0x54a   :  { %1188 = vmatpush3.bf16.msra.mxu1 %v1187_v11 }
 0x54d   :  { %1035 = vmatmul.mubr.f32.vlgmr.msra.gmra.mrb[4].mxu1 %v607_v48 }
 0x620   :  { %v701_v13 = vpop.f32.mrb[4].mxu1 }
 0x621   :  { %v702_v14 = vadd.f32 %v739_v12, %v701_v13  ;;  %v1036_v15 = vpop.f32.mrb[5].mxu1 }
 0x623   :  { %705 = vst [vmem:[#allocation9] sm:$0xff] %v702_v14 }
 0x624   :  { %1367 = shalt.err (!%p1364_p13)
}
 0x625   :  { %s1368_s20 = scalar_lea.hbm %s1729_s11, 128 }
 0x626   :  { %p1369_p0 = scmp.ne.s32.totalorder %s1729_s11, %s1368_s20  ;;  %p1372_p2 = scmp.lt.u32.totalorder %s1368_s20, %s1729_s11 }
 0x628   :  { %p1374_p3 = pnand %p1372_p2, %p1369_p0 }
 0x62a   :  { %1377 = shalt.err (!%p1374_p3)
}
 0x62b   :  { %715 = dma.vmem_to_hbm [thread:$0]  %s713_s5, 128, %s1729_s11, [#allocation8]  }
 0x62c   :  { %1392 = dma.done.wait [#allocation8], 128  }
 0x62d   :  { %1393 = vsyncadd [#allocation8], 4294967168 }
 0x62e   :  { %719 = vsyncpa [#allocation7], 1 }
 0x62f   :  { %720 = vsyncpa [#allocation8], 1 }
 0x630   :  { %721 = vsyncmov [#allocation5] }
 0x633   :  { %s722_s3 = vpop.sfrf %721 }
 0x634   :  { %p740_p8 = scmp.ne.s32.totalorder %s722_s3, 0 }
 0x636   :  { %726 = shalt.err (%p740_p8)  }
 0x637   :  { %728 = vsyncmov [#allocation5 + $0x1] }
 0x63a   :  { %s729_s7 = vpop.sfrf %728 }
 0x63b   :  { %p741_p4 = scmp.ne.s32.totalorder %s729_s7, 0 }
 0x63d   :  { %733 = shalt.err (%p741_p4)  }

</bundles_post_ra>
